<compile_context>
chip_gen: v6e
topology: v6e:2x2x1
jax: 0.10.0
libtpu: 0.0.40
codegen_flags: <defaults>
</compile_context>

<pallas_src>
from functools import partial

import jax
import jax.numpy as jnp
from jax.experimental import pallas as pl
from jax.experimental.pallas import tpu as pltpu


def _round_up(x, m):
    return ((x + m - 1) // m) * m


def _output_mlp_kernel(x_ref, w1_ref, b1_ref, w2_ref, b2_ref, o_ref):
    # x_ref : (Bt, Kp)  input dtype (f32 or bf16)
    # w1_ref: (Kp, Wp)  bf16, VMEM-resident across the whole grid
    # b1_ref: (1, Wp)   f32
    # w2_ref: (1, Wp)   f32
    # b2_ref: (1, 1)    f32, SMEM
    # o_ref : (Bt, 1)   f32
    x_bf16 = x_ref[...].astype(jnp.bfloat16)          # VPU cast, hides under DMA
    h = jnp.dot(x_bf16, w1_ref[...],
                preferred_element_type=jnp.float32)    # MXU @ bf16 rate, f32 acc
    h = h + b1_ref[...]
    h = jnp.where(h >= 0, h, 0.01 * h)                 # LeakyReLU(0.01), f32 on VPU
    # Second layer N=1: VPU multiply + XLU lane reduction (keeps MXU free).
    y = jnp.sum(h * w2_ref[...], axis=-1, keepdims=True) + b2_ref[0, 0]
    o_ref[...] = y.astype(o_ref.dtype)


def prepare_output_mlp_params(w1, b1, w2, b2, natoms):
    """Build kernel-side constants ONCE (hoisted out of the per-call hot path).

    w1: (W, F) with F = 2*num_scalars; b1: (W,); w2: (1, W); b2: (1,).
    Returns (w1_rep_bf16, b1_row, w2_row, b2_scalar).
    """
    width, feat = w1.shape
    k = natoms * feat
    kp = _round_up(k, 128)
    wp = _round_up(width, 128)

    # Fold the atom-sum into the matmul K dimension:
    #   sum_a x[b,a,:] @ W1^T  ==  x_flat[b,:] @ tile(W1^T, (A, 1))
    w1_rep = jnp.tile(jnp.transpose(w1).astype(jnp.float32), (natoms, 1))   # (K, W)
    # Zero-pad K / W to lane multiples (exact); then cast once to bf16.
    w1_rep = jnp.pad(w1_rep, ((0, kp - k), (0, wp - width))).astype(jnp.bfloat16)

    b1_row = jnp.pad(b1.reshape(1, width).astype(jnp.float32),
                     ((0, 0), (0, wp - width)))
    w2_row = jnp.pad(w2.reshape(1, width).astype(jnp.float32),
                     ((0, 0), (0, wp - width)))
    b2_s = b2.reshape(1, 1).astype(jnp.float32)
    return w1_rep, b1_row, w2_row, b2_s


def output_mlp_forward(scalars, w1_rep, b1_row, w2_row, b2_s, *, block_b=1024):
    """scalars: (B, A, S, 2); params from prepare_output_mlp_params. Returns (B,)."""
    B, A, S, C = scalars.shape
    assert C == 2
    K = A * 2 * S
    Kp, Wp = w1_rep.shape

    # Flatten atoms into the contraction dim.  No dtype cast here: a standalone
    # f32->bf16 astype would be an extra full HBM round trip; the cast happens on
    # the VMEM tile inside the kernel instead.
    x = scalars.reshape(B, K)
    if Kp != K:
        x = jnp.pad(x, ((0, 0), (0, Kp - K)))   # zero-pad: exact, lane-dense vregs

    # Batch tile: large (amortizes ~0.35 us/grid-step), sublane-aligned
    # (8 for f32 x, 16 for bf16 x), or the full (small) batch.
    sub = 16 if x.dtype == jnp.bfloat16 else 8
    bt = min(block_b, B)
    if bt != B and bt % sub != 0:
        bt = max(sub, (bt // sub) * sub)

    # VMEM budget: resident W1_rep (bf16) + double-buffered x tile + small rows/out.
    vmem_budget = 32 * 1024 * 1024              # safe ceiling on v5e/v6e/v7x
    resident = Kp * Wp * 2 + 3 * Wp * 4 * 2
    while bt > sub and resident + 2 * bt * (Kp * x.dtype.itemsize + 4) > vmem_budget:
        bt = max(sub, ((bt // 2) // sub) * sub)

    grid = (pl.cdiv(B, bt),)

    out = pl.pallas_call(
        _output_mlp_kernel,
        out_shape=jax.ShapeDtypeStruct((B, 1), jnp.float32),
        grid=grid,
        in_specs=[
            pl.BlockSpec((bt, Kp), lambda i: (i, 0)),            # x: batch-tiled, pipelined
            pl.BlockSpec((Kp, Wp), lambda i: (0, 0)),            # W1_rep (bf16): VMEM-resident
            pl.BlockSpec((1, Wp), lambda i: (0, 0)),             # b1
            pl.BlockSpec((1, Wp), lambda i: (0, 0)),             # w2 row
            pl.BlockSpec(memory_space=pltpu.MemorySpace.SMEM),   # b2 scalar
        ],
        out_specs=pl.BlockSpec((bt, 1), lambda i: (i, 0)),
        compiler_params=pltpu.CompilerParams(
            dimension_semantics=("parallel",),
            vmem_limit_bytes=vmem_budget,
        ),
    )(x, w1_rep, b1_row, w2_row, b2_s)
    return out[:, 0]                              # squeeze(-1) -> (B,)


def reference_forward_f32(scalars, w1, b1, w2, b2):
    """Pure-JAX f32 reference mirroring the PyTorch module exactly."""
    B = scalars.shape[0]
    s = scalars.astype(jnp.float32).sum(axis=1).reshape(B, -1)
    h = s @ w1.T + b1
    h = jnp.where(h >= 0, h, 0.01 * h)
    y = h @ w2.T + b2
    return y[:, 0]


def reference_forward_bf16(scalars, w1_rep, b1_row, w2_row, b2_s):
    """Reference mirroring the kernel numerics (bf16 MXU operands, f32 epilogue)."""
    B = scalars.shape[0]
    K = scalars.shape[1] * scalars.shape[2] * scalars.shape[3]
    Kp = w1_rep.shape[0]
    x = scalars.reshape(B, K)
    if Kp != K:
        x = jnp.pad(x, ((0, 0), (0, Kp - K)))
    h = jnp.dot(x.astype(jnp.bfloat16), w1_rep,
                preferred_element_type=jnp.float32) + b1_row
    h = jnp.where(h >= 0, h, 0.01 * h)
    return jnp.sum(h * w2_row, axis=-1) + b2_s[0, 0]


if __name__ == "__main__":
    natoms = 8
    num_scalars = 16          # -> MLP input features = 2 * 16 = 32
    layer_width = 256         # BasicMLP default; num_hidden=1

    key = jax.random.PRNGKey(0)
    k_x, k_w1, k_b1, k_w2, k_b2, k_x2 = jax.random.split(key, 6)

    fin = 2 * num_scalars
    # Deterministic, PyTorch-Linear-like uniform init (scale = 1/sqrt(fan_in)).
    w1 = jax.random.uniform(k_w1, (layer_width, fin), jnp.float32,
                            minval=-1.0, maxval=1.0) / jnp.sqrt(float(fin))
    b1 = jax.random.uniform(k_b1, (layer_width,), jnp.float32,
                            minval=-1.0, maxval=1.0) / jnp.sqrt(float(fin))
    w2 = jax.random.uniform(k_w2, (1, layer_width), jnp.float32,
                            minval=-1.0, maxval=1.0) / jnp.sqrt(float(layer_width))
    b2 = jax.random.uniform(k_b2, (1,), jnp.float32,
                            minval=-1.0, maxval=1.0) / jnp.sqrt(float(layer_width))

    # Constants built once (tile/transpose/pad/bf16-cast hoisted out of hot path).
    w1_rep, b1_row, w2_row, b2_s = prepare_output_mlp_params(w1, b1, w2, b2, natoms)
    fwd = jax.jit(output_mlp_forward, static_argnames=("block_b",))

    # Case 1: small batch (single grid step, block == full batch), default block_b.
    scalars = jax.random.normal(k_x, (2, natoms, num_scalars, 2), dtype=jnp.float32)
    out = jax.block_until_ready(fwd(scalars, w1_rep, b1_row, w2_row, b2_s))
    ref32 = reference_forward_f32(scalars, w1, b1, w2, b2)
    ref16 = reference_forward_bf16(scalars, w1_rep, b1_row, w2_row, b2_s)
    assert out.shape == (2,), out.shape
    assert jnp.allclose(out, ref16, atol=1e-3, rtol=1e-3), (out, ref16)
    assert jnp.allclose(out, ref32, atol=5e-2, rtol=5e-2), (out, ref32)

    # Case 2: multi-step grid + partial last block (B=20, bt=8 -> 3 steps), f32 x.
    scalars2 = jax.random.normal(k_x2, (20, natoms, num_scalars, 2), dtype=jnp.float32)
    out2 = jax.block_until_ready(fwd(scalars2, w1_rep, b1_row, w2_row, b2_s, block_b=8))
    ref32_2 = reference_forward_f32(scalars2, w1, b1, w2, b2)
    ref16_2 = reference_forward_bf16(scalars2, w1_rep, b1_row, w2_row, b2_s)
    assert out2.shape == (20,), out2.shape
    assert jnp.allclose(out2, ref16_2, atol=1e-3, rtol=1e-3), (out2, ref16_2)
    assert jnp.allclose(out2, ref32_2, atol=5e-2, rtol=5e-2), (out2, ref32_2)

    # Case 3: producer already emits bf16 (half x DMA bytes; in-kernel cast no-op),
    # bt=16 (bf16 sublane alignment) -> 2 steps with a partial last block.
    scalars3 = scalars2.astype(jnp.bfloat16)
    out3 = jax.block_until_ready(fwd(scalars3, w1_rep, b1_row, w2_row, b2_s, block_b=16))
    ref16_3 = reference_forward_bf16(scalars3, w1_rep, b1_row, w2_row, b2_s)
    assert out3.shape == (20,), out3.shape
    assert jnp.allclose(out3, ref16_3, atol=1e-3, rtol=1e-3), (out3, ref16_3)

    print("KERNEL_OK")
</pallas_src>

<mosaic_0001>
module attributes {stable_mosaic.version = 11 : i64} {
  func.func @_output_mlp_kernel(%arg0: i32, %arg1: memref<2x256xf32, #tpu.memory_space<vmem>>, %arg2: memref<256x256xbf16, #tpu.memory_space<vmem>>, %arg3: memref<1x256xf32, #tpu.memory_space<vmem>>, %arg4: memref<1x256xf32, #tpu.memory_space<vmem>>, %arg5: memref<1x1xf32, #tpu.memory_space<smem>>, %arg6: memref<2x1xf32, #tpu.memory_space<vmem>>) attributes {dimension_semantics = [#tpu.dimension_semantics<parallel>], iteration_bounds = array<i64: 1>, scalar_prefetch = 0 : i64, scratch_operands = 0 : i64, tpu.core_type = #tpu.core_type<tc>, window_params = [{transform_indices = @transform_0, window_bounds = array<i64: 2, 256>}, {pipeline_mode = #tpu.pipeline_mode<synchronous>, transform_indices = @transform_1, window_bounds = array<i64: 256, 256>}, {pipeline_mode = #tpu.pipeline_mode<synchronous>, transform_indices = @transform_2, window_bounds = array<i64: 1, 256>}, {pipeline_mode = #tpu.pipeline_mode<synchronous>, transform_indices = @transform_3, window_bounds = array<i64: 1, 256>}, {transform_indices = @transform_4, window_bounds = array<i64: 1, 1>}, {transform_indices = @transform_5, window_bounds = array<i64: 2, 1>}]} {
    %c0 = arith.constant 0 : index
    %c0_0 = arith.constant 0 : index
    %0 = vector.load %arg1[%c0, %c0_0] : memref<2x256xf32, #tpu.memory_space<vmem>>, vector<2x256xf32>
    %1 = arith.truncf %0 : vector<2x256xf32> to vector<2x256xbf16>
    %c0_1 = arith.constant 0 : index
    %c0_2 = arith.constant 0 : index
    %2 = vector.load %arg2[%c0_1, %c0_2] : memref<256x256xbf16, #tpu.memory_space<vmem>>, vector<256x256xbf16>
    %cst = arith.constant dense<0.000000e+00> : vector<2x256xf32>
    %3 = tpu.matmul %1, %2, %cst {dimension_numbers = #tpu.dot_dimension_numbers<[1], [0], [0], [1], [0, 0, 1, 1], [], []>} : vector<2x256xbf16>, vector<256x256xbf16>, vector<2x256xf32> -> vector<2x256xf32>
    %c0_3 = arith.constant 0 : index
    %c0_4 = arith.constant 0 : index
    %4 = vector.load %arg3[%c0_3, %c0_4] : memref<1x256xf32, #tpu.memory_space<vmem>>, vector<1x256xf32>
    %5 = vector.broadcast %4 : vector<1x256xf32> to vector<2x256xf32>
    %6 = arith.addf %3, %5 : vector<2x256xf32>
    %cst_5 = arith.constant 0.000000e+00 : f32
    %7 = vector.broadcast %cst_5 : f32 to vector<2x256xf32>
    %8 = arith.cmpf oge, %6, %7 : vector<2x256xf32>
    %cst_6 = arith.constant 0.00999999977 : f32
    %9 = vector.broadcast %cst_6 : f32 to vector<2x256xf32>
    %10 = arith.mulf %9, %6 : vector<2x256xf32>
    %11 = arith.select %8, %6, %10 : vector<2x256xi1>, vector<2x256xf32>
    %c0_7 = arith.constant 0 : index
    %c0_8 = arith.constant 0 : index
    %12 = vector.load %arg4[%c0_7, %c0_8] : memref<1x256xf32, #tpu.memory_space<vmem>>, vector<1x256xf32>
    %13 = vector.broadcast %12 : vector<1x256xf32> to vector<2x256xf32>
    %14 = arith.mulf %11, %13 : vector<2x256xf32>
    %cst_9 = arith.constant dense<0.000000e+00> : vector<2xf32>
    %15 = vector.multi_reduction <add>, %14, %cst_9 [1] : vector<2x256xf32> to vector<2xf32>
    %16 = vector.shape_cast %15 : vector<2xf32> to vector<2x1xf32>
    %c0_10 = arith.constant 0 : index
    %c0_11 = arith.constant 0 : index
    %17 = memref.load %arg5[%c0_10, %c0_11] : memref<1x1xf32, #tpu.memory_space<smem>>
    %18 = vector.broadcast %17 : f32 to vector<2x1xf32>
    %19 = arith.addf %16, %18 : vector<2x1xf32>
    %c0_12 = arith.constant 0 : index
    %c0_13 = arith.constant 0 : index
    %20 = vector.load %arg6[%c0_12, %c0_13] : memref<2x1xf32, #tpu.memory_space<vmem>>, vector<2x1xf32>
    tpu.vector_store %arg6[%c0_12, %c0_13], %19 {strides = array<i32>} : memref<2x1xf32, #tpu.memory_space<vmem>>, vector<2x1xf32>,
    return
  }
  func.func @transform_0(%arg0: i32) -> (i32, i32) {
    %c0_i32 = arith.constant 0 : i32
    %c0_i32_0 = arith.constant 0 : i32
    return %arg0, %c0_i32 : i32, i32
  }
  func.func @transform_1(%arg0: i32) -> (i32, i32) {
    %c0_i32 = arith.constant 0 : i32
    %c0_i32_0 = arith.constant 0 : i32
    %c0_i32_1 = arith.constant 0 : i32
    return %c0_i32, %c0_i32_0 : i32, i32
  }
  func.func @transform_2(%arg0: i32) -> (i32, i32) {
    %c0_i32 = arith.constant 0 : i32
    %c0_i32_0 = arith.constant 0 : i32
    %c0_i32_1 = arith.constant 0 : i32
    return %c0_i32, %c0_i32_0 : i32, i32
  }
  func.func @transform_3(%arg0: i32) -> (i32, i32) {
    %c0_i32 = arith.constant 0 : i32
    %c0_i32_0 = arith.constant 0 : i32
    %c0_i32_1 = arith.constant 0 : i32
    return %c0_i32, %c0_i32_0 : i32, i32
  }
  func.func @transform_4(%arg0: i32) -> (i32, i32) {
    %c0_i32 = arith.constant 0 : i32
    %c0_i32_0 = arith.constant 0 : i32
    %c0_i32_1 = arith.constant 0 : i32
    return %c0_i32, %c0_i32_0 : i32, i32
  }
  func.func @transform_5(%arg0: i32) -> (i32, i32) {
    %c0_i32 = arith.constant 0 : i32
    %c0_i32_0 = arith.constant 0 : i32
    return %arg0, %c0_i32 : i32, i32
  }
}

</mosaic_0001>

<bundles_post_ra>
// kernel: output_mlp_forward.1
= control target key start
LH: loop header
LB: loop body
LE: loop exit
PB: predicated region body
PF: predicated region fallthrough
CT: control target
= control target key end

     0   :  { %v69_v36 = vlaneseq  ;;  %vm300_vm2 = vcmask 1041408   ;;  %vm309_vm3 = vcmask 1024   ;;  %s537_s1 = inlined_call_operand.vmem [shape: bf16[256,256], index: 1, kind: input, shape index: {}]   ;;  %s538_s0 = inlined_call_operand.vmem [shape: f32[2,256], index: 0, kind: input, shape index: {}]   ;;  %s539_s2 = inlined_call_operand.vmem [shape: f32[1,256], index: 2, kind: input, shape index: {}]   ;;  %s540_s3 = inlined_call_operand.vmem [shape: f32[1,256], index: 3, kind: input, shape index: {}]   ;;  %s541_s4 = inlined_call_operand.<no memory space> [shape: f32[1,1], index: 4, kind: input, shape index: {}]   ;;  %s542_s5 = inlined_call_operand.vmem [shape: f32[2,1], index: 5, kind: output, shape index: {}]  }
   0x1   :  { %v348_v0 = vld [vmem:[%s537_s1 + $0x74] ss:$8 sps:$4 sm:$0xff]   ;;  %v350_v1 = vld [vmem:[%s537_s1 + $0x70] ss:$8 sps:$4 sm:$0xff]   ;;  %v351_v2 = vld [vmem:[%s537_s1 + $0x64] ss:$8 sps:$4 sm:$0xff]   ;;  %v307_v61 = vstv %s541_s4 }
   0x2   :  { %239 = vmatprep.subr.bf16.mxu0 %v348_v0  ;;  %v353_v3 = vld [vmem:[%s537_s1 + $0x60] ss:$8 sps:$4 sm:$0xff]   ;;  %v354_v4 = vld [vmem:[%s537_s1 + $0x54] ss:$8 sps:$4 sm:$0xff]   ;;  %v356_v5 = vld [vmem:[%s537_s1 + $0x50] ss:$8 sps:$4 sm:$0xff]  }
   0x3   :  { %240 = vmatpush1.bf16.msra.mxu0 %v350_v1  ;;  %v357_v6 = vld [vmem:[%s537_s1 + $0x44] ss:$8 sps:$4 sm:$0xff]   ;;  %v359_v7 = vld [vmem:[%s537_s1 + $0x40] ss:$8 sps:$4 sm:$0xff]   ;;  %v360_v8 = vld [vmem:[%s537_s1 + $0x34] ss:$8 sps:$4 sm:$0xff]  }
   0x4   :  { %241 = vmatprep.subr.bf16.mxu0 %v351_v2  ;;  %v362_v9 = vld [vmem:[%s537_s1 + $0x30] ss:$8 sps:$4 sm:$0xff]   ;;  %v363_v10 = vld [vmem:[%s537_s1 + $0x24] ss:$8 sps:$4 sm:$0xff]   ;;  %v365_v11 = vld [vmem:[%s537_s1 + $0x20] ss:$8 sps:$4 sm:$0xff]  }
   0x5   :  { %v366_v12 = vld [vmem:[%s537_s1 + $0x14] ss:$8 sps:$4 sm:$0xff]   ;;  %v315_v13 = vld.sshfl [vmem:[%s538_s0] sm:$0x33 pattern:$0x76325410] }
   0x6   :  { %v30_v14 = vcombine.high %v315_v13, %v315_v13  ;;  %v368_v15 = vld [vmem:[%s537_s1 + $0x10] ss:$8 sps:$4 sm:$0xff]   ;;  %v369_v16 = vld [vmem:[%s537_s1 + $0x4] ss:$8 sps:$4 sm:$0xff]   ;;  %v371_v18 = vld [vmem:[%s537_s1] ss:$8 sps:$4 sm:$0xff]   ;;  %v33_v35 = vpack.c.bf16 %v315_v13, %v315_v13 }
   0x7   :  { %242 = vmatpush1.bf16.msra.mxu0 %v353_v3  ;;  %v372_v19 = vld [vmem:[%s537_s1 + $0xf4] ss:$8 sps:$4 sm:$0xff]   ;;  %v374_v20 = vld [vmem:[%s537_s1 + $0xf0] ss:$8 sps:$4 sm:$0xff]   ;;  %v375_v21 = vld [vmem:[%s537_s1 + $0xe4] ss:$8 sps:$4 sm:$0xff]  }
   0x8   :  { %243 = vmatprep.subr.bf16.mxu0 %v354_v4  ;;  %v34_v17 = vpack.c.bf16 %v30_v14, %v30_v14  ;;  %v377_v22 = vld [vmem:[%s537_s1 + $0xe0] ss:$8 sps:$4 sm:$0xff]   ;;  %v378_v23 = vld [vmem:[%s537_s1 + $0xd4] ss:$8 sps:$4 sm:$0xff]   ;;  %v380_v24 = vld [vmem:[%s537_s1 + $0xd0] ss:$8 sps:$4 sm:$0xff]  }
   0x9   :  { %v381_v25 = vld [vmem:[%s537_s1 + $0xc4] ss:$8 sps:$4 sm:$0xff]   ;;  %v383_v26 = vld [vmem:[%s537_s1 + $0xc0] ss:$8 sps:$4 sm:$0xff]   ;;  %v384_v27 = vld [vmem:[%s537_s1 + $0xb4] ss:$8 sps:$4 sm:$0xff]  }
   0xa   :  { %271 = vmatprep.mubr.bf16.mxu0 %v34_v17  ;;  %v386_v28 = vld [vmem:[%s537_s1 + $0xb0] ss:$8 sps:$4 sm:$0xff]   ;;  %v387_v29 = vld [vmem:[%s537_s1 + $0xa4] ss:$8 sps:$4 sm:$0xff]   ;;  %v389_v30 = vld [vmem:[%s537_s1 + $0xa0] ss:$8 sps:$4 sm:$0xff]  }
   0xb   :  { %244 = vmatpush1.bf16.msra.mxu0 %v356_v5  ;;  %v390_v31 = vld [vmem:[%s537_s1 + $0x94] ss:$8 sps:$4 sm:$0xff]   ;;  %v392_v32 = vld [vmem:[%s537_s1 + $0x90] ss:$8 sps:$4 sm:$0xff]   ;;  %v393_v33 = vld [vmem:[%s537_s1 + $0x84] ss:$8 sps:$4 sm:$0xff]  }
   0xc   :  { %245 = vmatprep.subr.bf16.mxu0 %v357_v6  ;;  %v395_v34 = vld [vmem:[%s537_s1 + $0x80] ss:$8 sps:$4 sm:$0xff]   ;;  %v70_v37 = vshrl.u32 %v69_v36, 7 }
   0xd   :  { %v67_v39 = vld [vmem:[%s539_s2] sm:$0x3] }
   0xe   :  { %v71_v38 = vsub.s32 0, %v70_v37  ;;  %v75_v40 = vsub.s32 1, %v70_v37  ;;  %v286_v43 = vld [vmem:[%s540_s3] sm:$0x3] }
   0xf   :  { %246 = vmatpush1.bf16.msra.mxu0 %v359_v7 }
  0x10   :  { %247 = vmatprep.subr.bf16.mxu0 %v360_v8  ;;  %v72_v41 = vrot.slane %v67_v39, %v71_v38  ;;  %v76_v42 = vrot.slane %v67_v39, %v75_v40  ;;  %v291_v47 = vrot.slane %v286_v43, %v71_v38  ;;  %v295_v51 = vrot.slane %v286_v43, %v75_v40 }
  0x13   :  { %248 = vmatpush1.bf16.msra.mxu0 %v362_v9 }
  0x14   :  { %249 = vmatprep.subr.bf16.mxu0 %v363_v10 }
  0x17   :  { %250 = vmatpush1.bf16.msra.mxu0 %v365_v11 }
  0x18   :  { %251 = vmatprep.subr.bf16.mxu0 %v366_v12 }
  0x1b   :  { %252 = vmatpush1.bf16.msra.mxu0 %v368_v15 }
  0x1c   :  { %253 = vmatprep.subr.bf16.mxu0 %v369_v16 }
  0x1f   :  { %254 = vmatpush1.bf16.msra.mxu0 %v371_v18 }
  0x20   :  { %255 = vmatprep.subr.bf16.mxu0 %v372_v19 }
  0x23   :  { %256 = vmatpush2.bf16.msra.mxu0 %v374_v20 }
  0x24   :  { %257 = vmatprep.subr.bf16.mxu0 %v375_v21 }
  0x27   :  { %258 = vmatpush2.bf16.msra.mxu0 %v377_v22 }
  0x28   :  { %259 = vmatprep.subr.bf16.mxu0 %v378_v23 }
  0x2b   :  { %260 = vmatpush2.bf16.msra.mxu0 %v380_v24 }
  0x2c   :  { %261 = vmatprep.subr.bf16.mxu0 %v381_v25 }
  0x2f   :  { %262 = vmatpush2.bf16.msra.mxu0 %v383_v26 }
  0x30   :  { %263 = vmatprep.subr.bf16.mxu0 %v384_v27 }
  0x33   :  { %264 = vmatpush2.bf16.msra.mxu0 %v386_v28 }
  0x34   :  { %265 = vmatprep.subr.bf16.mxu0 %v387_v29 }
  0x37   :  { %266 = vmatpush2.bf16.msra.mxu0 %v389_v30 }
  0x38   :  { %267 = vmatprep.subr.bf16.mxu0 %v390_v31 }
  0x3b   :  { %268 = vmatpush2.bf16.msra.mxu0 %v392_v32 }
  0x3c   :  { %269 = vmatprep.subr.bf16.mxu0 %v393_v33 }
  0x3f   :  { %270 = vmatpush2.bf16.msra.mxu0 %v395_v34 }
  0x42   :  { %272 = vmatmul.mubr.bf16.vlgmr.msra.gmra.mxu0 %v33_v35 }
 0x102   :  { %v273_v44 = vpop.f32.mrf.mxu0 }
 0x103   :  { %v274_v45 = vadd.f32 %v273_v44, %v72_v41 }
 0x104   :  { %v275_v46 = vpop.f32.mrf.mxu0 }
 0x105   :  { %vm280_vm0 = vcmp.ge.f32.partialorder %v274_v45, 0.0  ;;  %v282_v48 = vmul.f32 0.01, %v274_v45  ;;  %v276_v49 = vadd.f32 %v275_v46, %v76_v42 }
 0x106   :  { %v277_v50 = vpop.f32.mrf.mxu0 }
 0x107   :  { %vm281_vm1 = vcmp.ge.f32.partialorder %v276_v49, 0.0  ;;  %v283_v52 = vmul.f32 0.01, %v276_v49  ;;  %v284_v53 = vsel %vm280_vm0, %v274_v45, %v282_v48 }
 0x108   :  { %v278_v54 = vpop.f32.mrf.mxu0  ;;  %v298_v55 = vmul.f32 %v291_v47, %v284_v53 }
 0x109   :  { %v285_v56 = vsel %vm281_vm1, %v276_v49, %v283_v52 }
 0x10a   :  { %v299_v57 = vmul.f32 %v295_v51, %v285_v56  ;;  %v301_v58 = vsel %vm300_vm2, %v298_v55, 0.0 }
 0x10c   :  { %v302_v59 = vsel %vm300_vm2, %v299_v57, 0.0 }
 0x10d   :  { %v303_v60 = vadd.f32 %v302_v59, %v301_v58 }
 0x10f   :  { %304 = vadd.xlane.f32.xlu0 %v303_v60 }
 0x198   :  { %v305_v62 = vpop.xlane.xlu0 %304 }
 0x199   :  { %v308_v63 = vadd.f32 %v307_v61, %v305_v62 }
 0x19b   :  { %310 = vst.msk [vmem:[%s542_s5] sm:$0x3] %vm309_vm3, %v308_v63 }

</bundles_post_ra>
